<compile_context>
chip_gen: v7x
topology: tpu7x:2x2x1
jax: 0.10.0
libtpu: 0.0.40
codegen_flags: <defaults>
</compile_context>

<pallas_src>
import math

import jax
import jax.numpy as jnp
from jax.experimental import pallas as pl
from jax.experimental.pallas import tpu as pltpu


def _round_up(n, m):
    return ((n + m - 1) // m) * m


def _pad_axis(x, target, axis):
    pad = target - x.shape[axis]
    if pad <= 0:
        return x
    widths = [(0, 0)] * x.ndim
    widths[axis] = (0, pad)
    return jnp.pad(x, widths)


def _lrbp_kernel(x1_ref, x2_ref, w1_ref, w2_ref, wp_ref, bp_ref, o_ref):
    """Per-channel output path: out[b, o] = relu(x1@W1)*relu(x2@W2) @ Wp + bp."""
    cdt = w1_ref.dtype
    h1 = jnp.maximum(
        jnp.dot(x1_ref[...].astype(cdt), w1_ref[...],
                preferred_element_type=jnp.float32), 0.0)
    h2 = jnp.maximum(
        jnp.dot(x2_ref[...].astype(cdt), w2_ref[...],
                preferred_element_type=jnp.float32), 0.0)
    fused = (h1 * h2).astype(cdt)
    out = jnp.dot(fused, wp_ref[...],
                  preferred_element_type=jnp.float32) + bp_ref[...]
    o_ref[...] = out.astype(o_ref.dtype)


def _lrbp_sum_kernel(x1_ref, x2_ref, w1_ref, w2_ref, wsum_ref, bsum_ref, o_ref):
    """sum_pool path.

    sum_o((h1*h2) @ Wp + bp)[b] == (h1*h2) @ Wp.sum(-1) + bp.sum()  (linearity),
    so the third MXU pass over O is replaced by a VPU mul + XLU lane reduce.
    """
    cdt = w1_ref.dtype
    h1 = jnp.maximum(
        jnp.dot(x1_ref[...].astype(cdt), w1_ref[...],
                preferred_element_type=jnp.float32), 0.0)
    h2 = jnp.maximum(
        jnp.dot(x2_ref[...].astype(cdt), w2_ref[...],
                preferred_element_type=jnp.float32), 0.0)
    fused = h1 * h2                                       # [TB, Hp] f32
    out = jnp.sum(fused * wsum_ref[...], axis=-1, keepdims=True) + bsum_ref[0, 0]
    o_ref[...] = out.astype(o_ref.dtype)


def low_rank_bilinear_pooling(
    x1, x2, w1, w2, wp, bp, *, sum_pool=False,
    compute_dtype=jnp.bfloat16, out_dtype=jnp.float32,
    vmem_budget_bytes=12 * 1024 * 1024,
):
    """x1:[B,C1], x2:[B,C2], w1:[C1,H], w2:[C2,H], wp:[H,O], bp:[O] or [1,O]."""
    B, C1 = x1.shape
    _, C2 = x2.shape
    H = w1.shape[1]
    O = wp.shape[1]

    LANE, SUB = 128, 8
    Hp, Op = _round_up(H, LANE), _round_up(O, LANE)

    cbytes = jnp.dtype(compute_dtype).itemsize
    obytes = jnp.dtype(out_dtype).itemsize
    ibytes = jnp.dtype(x1.dtype).itemsize

    # Weights: bf16, zero-padded on H (and O). One-time cost, VMEM-resident.
    w1p = _pad_axis(w1.astype(compute_dtype), Hp, 1)
    w2p = _pad_axis(w2.astype(compute_dtype), Hp, 1)

    if sum_pool:
        out_cols = 1
        # Fold the output projection: Wp -> row-sum over O (f32), bp -> scalar.
        wp_arr = _pad_axis(
            jnp.sum(wp, axis=1, dtype=jnp.float32).reshape(1, H), Hp, 1)     # [1, Hp] f32
        b_arr = jnp.sum(bp, dtype=jnp.float32).reshape(1, 1)                 # [1, 1]  f32 (SMEM)
        kernel = _lrbp_sum_kernel
        weight_bytes = (C1 * Hp + C2 * Hp) * cbytes + Hp * 4 + 4
        flops = 2 * B * (C1 + C2) * Hp + 2 * B * Hp
    else:
        out_cols = Op
        wp_arr = _pad_axis(_pad_axis(wp.astype(compute_dtype), Hp, 0), Op, 1)  # [Hp, Op] bf16
        b_arr = _pad_axis(bp.reshape(1, O).astype(jnp.float32), Op, 1)         # [1, Op]  f32
        kernel = _lrbp_kernel
        weight_bytes = (C1 * Hp + C2 * Hp + Hp * Op) * cbytes + Op * 4
        flops = 2 * B * ((C1 + C2) * Hp + Hp * Op)

    # --- batch tile size from a conservative VMEM budget -----------------------
    per_row = (
        2 * (C1 + C2) * ibytes                 # double-buffered x1/x2 tiles (orig dtype)
        + 2 * out_cols * obytes                # double-buffered output tile
        + (2 * Hp + max(out_cols, Hp)) * 4     # f32 intermediates (h1, h2, out/fused)
    )
    tb = (vmem_budget_bytes - 2 * weight_bytes) // max(per_row, 1)
    tb = int(max(SUB, min(tb, 1024, _round_up(B, SUB))))
    tb = (tb // SUB) * SUB

    Bp = _round_up(B, tb)
    x1p = _pad_axis(x1, Bp, 0)       # no-op copy when B % tb == 0
    x2p = _pad_axis(x2, Bp, 0)
    grid = (Bp // tb,)

    bytes_accessed = (
        Bp * (C1 + C2) * ibytes + weight_bytes + Bp * out_cols * obytes
    )

    in_specs = [
        pl.BlockSpec((tb, C1), lambda i: (i, 0)),    # x1 tile, streamed
        pl.BlockSpec((tb, C2), lambda i: (i, 0)),    # x2 tile, streamed
        pl.BlockSpec((C1, Hp), lambda i: (0, 0)),    # w1, VMEM-resident
        pl.BlockSpec((C2, Hp), lambda i: (0, 0)),    # w2, VMEM-resident
    ]
    if sum_pool:
        in_specs += [
            pl.BlockSpec((1, Hp), lambda i: (0, 0)),                 # Wp row-sum
            pl.BlockSpec(memory_space=pltpu.MemorySpace.SMEM),       # bias sum (scalar)
        ]
    else:
        in_specs += [
            pl.BlockSpec((Hp, Op), lambda i: (0, 0)),                # Wp, VMEM-resident
            pl.BlockSpec((1, Op), lambda i: (0, 0)),                 # bias row
        ]

    out = pl.pallas_call(
        kernel,
        out_shape=jax.ShapeDtypeStruct((Bp, out_cols), out_dtype),
        grid=grid,
        in_specs=in_specs,
        out_specs=pl.BlockSpec((tb, out_cols), lambda i: (i, 0)),
        compiler_params=pltpu.CompilerParams(
            dimension_semantics=("parallel",),
        ),
        cost_estimate=pl.CostEstimate(
            flops=flops, transcendentals=0, bytes_accessed=bytes_accessed
        ),
    )(x1p, x2p, w1p, w2p, wp_arr, b_arr)

    if sum_pool:
        return out[:B, 0]        # [B], matches torch .sum(dim=(1, 2))
    return out[:B, :O]           # [B, O]


def _kaiming_uniform(key, fan_in, shape):
    bound = math.sqrt(6.0 / fan_in)
    return jax.random.uniform(key, shape, jnp.float32, -bound, bound)


def reference_f32(x1, x2, w1, w2, wp, bp):
    h1 = jnp.maximum(x1 @ w1, 0.0)
    h2 = jnp.maximum(x2 @ w2, 0.0)
    return (h1 * h2) @ wp + bp.reshape(1, -1)


def reference_kernel_numerics(x1, x2, w1, w2, wp, bp, sum_pool):
    # Emulates the kernel's bf16-operand / f32-accumulation numerics.
    c = lambda a: a.astype(jnp.bfloat16).astype(jnp.float32)
    h1 = jnp.maximum(c(x1) @ c(w1), 0.0)
    h2 = jnp.maximum(c(x2) @ c(w2), 0.0)
    fused = h1 * h2
    if sum_pool:
        return fused @ jnp.sum(wp, axis=1) + jnp.sum(bp)
    return c(fused) @ c(wp) + bp.reshape(1, -1)


if __name__ == "__main__":
    B, C1, C2, H, O = 8, 32, 48, 64, 16

    key = jax.random.PRNGKey(0)
    k_x1, k_x2, k_w1, k_w2, k_wp, k_bp = jax.random.split(key, 6)

    x1 = jax.random.normal(k_x1, (B, C1), jnp.float32)
    x2 = jax.random.normal(k_x2, (B, C2), jnp.float32)

    # Parameters (pre-transposed to [in, out] layout for x @ W matmuls).
    w1 = _kaiming_uniform(k_w1, C1, (C1, H))
    w2 = _kaiming_uniform(k_w2, C2, (C2, H))
    wp = _kaiming_uniform(k_wp, H, (H, O))
    bp = jax.random.uniform(
        k_bp, (1, O), jnp.float32, -1.0 / math.sqrt(H), 1.0 / math.sqrt(H)
    )

    out = low_rank_bilinear_pooling(x1, x2, w1, w2, wp, bp, sum_pool=False)
    out = jax.block_until_ready(out)
    out_sum = low_rank_bilinear_pooling(x1, x2, w1, w2, wp, bp, sum_pool=True)
    out_sum = jax.block_until_ready(out_sum)

    ref32 = reference_f32(x1, x2, w1, w2, wp, bp)
    ref16 = reference_kernel_numerics(x1, x2, w1, w2, wp, bp, sum_pool=False)
    ref16_sum = reference_kernel_numerics(x1, x2, w1, w2, wp, bp, sum_pool=True)

    assert out.shape == (B, O)
    assert out_sum.shape == (B,)
    # Tight checks vs references emulating the kernel's numerics.
    assert jnp.allclose(out, ref16, atol=2e-2, rtol=2e-2), "mismatch vs bf16 reference"
    assert jnp.allclose(out_sum, ref16_sum, atol=2e-2, rtol=2e-2), \
        "sum_pool mismatch vs emulated reference"
    # Loose sanity check vs the pure-f32 PyTorch-equivalent reference.
    assert jnp.allclose(out, ref32, atol=1.5e-1, rtol=1e-1), "mismatch vs f32 reference"

    print("KERNEL_OK")
</pallas_src>

<mosaic_0001>
module attributes {stable_mosaic.version = 11 : i64} {
  func.func @_lrbp_kernel(%arg0: i32, %arg1: memref<8x32xf32, #tpu.memory_space<vmem>>, %arg2: memref<8x48xf32, #tpu.memory_space<vmem>>, %arg3: memref<32x128xbf16, #tpu.memory_space<vmem>>, %arg4: memref<48x128xbf16, #tpu.memory_space<vmem>>, %arg5: memref<128x128xbf16, #tpu.memory_space<vmem>>, %arg6: memref<1x128xf32, #tpu.memory_space<vmem>>, %arg7: memref<8x128xf32, #tpu.memory_space<vmem>>) attributes {dimension_semantics = [#tpu.dimension_semantics<parallel>], iteration_bounds = array<i64: 1>, scalar_prefetch = 0 : i64, scratch_operands = 0 : i64, tpu.core_type = #tpu.core_type<tc>, window_params = [{transform_indices = @transform_0, window_bounds = array<i64: 8, 32>}, {transform_indices = @transform_1, window_bounds = array<i64: 8, 48>}, {pipeline_mode = #tpu.pipeline_mode<synchronous>, transform_indices = @transform_2, window_bounds = array<i64: 32, 128>}, {pipeline_mode = #tpu.pipeline_mode<synchronous>, transform_indices = @transform_3, window_bounds = array<i64: 48, 128>}, {pipeline_mode = #tpu.pipeline_mode<synchronous>, transform_indices = @transform_4, window_bounds = array<i64: 128, 128>}, {pipeline_mode = #tpu.pipeline_mode<synchronous>, transform_indices = @transform_5, window_bounds = array<i64: 1, 128>}, {transform_indices = @transform_6, window_bounds = array<i64: 8, 128>}]} {
    %c0 = arith.constant 0 : index
    %c0_0 = arith.constant 0 : index
    %0 = vector.load %arg1[%c0, %c0_0] : memref<8x32xf32, #tpu.memory_space<vmem>>, vector<8x32xf32>
    %1 = arith.truncf %0 : vector<8x32xf32> to vector<8x32xbf16>
    %c0_1 = arith.constant 0 : index
    %c0_2 = arith.constant 0 : index
    %2 = vector.load %arg3[%c0_1, %c0_2] : memref<32x128xbf16, #tpu.memory_space<vmem>>, vector<32x128xbf16>
    %cst = arith.constant dense<0.000000e+00> : vector<8x128xf32>
    %3 = tpu.matmul %1, %2, %cst {dimension_numbers = #tpu.dot_dimension_numbers<[1], [0], [0], [1], [0, 0, 1, 1], [], []>} : vector<8x32xbf16>, vector<32x128xbf16>, vector<8x128xf32> -> vector<8x128xf32>
    %cst_3 = arith.constant 0.000000e+00 : f32
    %4 = vector.broadcast %cst_3 : f32 to vector<8x128xf32>
    %5 = arith.maximumf %3, %4 : vector<8x128xf32>
    %c0_4 = arith.constant 0 : index
    %c0_5 = arith.constant 0 : index
    %6 = vector.load %arg2[%c0_4, %c0_5] : memref<8x48xf32, #tpu.memory_space<vmem>>, vector<8x48xf32>
    %7 = arith.truncf %6 : vector<8x48xf32> to vector<8x48xbf16>
    %c0_6 = arith.constant 0 : index
    %c0_7 = arith.constant 0 : index
    %8 = vector.load %arg4[%c0_6, %c0_7] : memref<48x128xbf16, #tpu.memory_space<vmem>>, vector<48x128xbf16>
    %cst_8 = arith.constant dense<0.000000e+00> : vector<8x128xf32>
    %9 = tpu.matmul %7, %8, %cst_8 {dimension_numbers = #tpu.dot_dimension_numbers<[1], [0], [0], [1], [0, 0, 1, 1], [], []>} : vector<8x48xbf16>, vector<48x128xbf16>, vector<8x128xf32> -> vector<8x128xf32>
    %cst_9 = arith.constant 0.000000e+00 : f32
    %10 = vector.broadcast %cst_9 : f32 to vector<8x128xf32>
    %11 = arith.maximumf %9, %10 : vector<8x128xf32>
    %12 = arith.mulf %5, %11 : vector<8x128xf32>
    %13 = arith.truncf %12 : vector<8x128xf32> to vector<8x128xbf16>
    %c0_10 = arith.constant 0 : index
    %c0_11 = arith.constant 0 : index
    %14 = vector.load %arg5[%c0_10, %c0_11] : memref<128x128xbf16, #tpu.memory_space<vmem>>, vector<128x128xbf16>
    %cst_12 = arith.constant dense<0.000000e+00> : vector<8x128xf32>
    %15 = tpu.matmul %13, %14, %cst_12 {dimension_numbers = #tpu.dot_dimension_numbers<[1], [0], [0], [1], [0, 0, 1, 1], [], []>} : vector<8x128xbf16>, vector<128x128xbf16>, vector<8x128xf32> -> vector<8x128xf32>
    %c0_13 = arith.constant 0 : index
    %c0_14 = arith.constant 0 : index
    %16 = vector.load %arg6[%c0_13, %c0_14] : memref<1x128xf32, #tpu.memory_space<vmem>>, vector<1x128xf32>
    %17 = vector.broadcast %16 : vector<1x128xf32> to vector<8x128xf32>
    %18 = arith.addf %15, %17 : vector<8x128xf32>
    %c0_15 = arith.constant 0 : index
    %c0_16 = arith.constant 0 : index
    %19 = vector.load %arg7[%c0_15, %c0_16] : memref<8x128xf32, #tpu.memory_space<vmem>>, vector<8x128xf32>
    tpu.vector_store %arg7[%c0_15, %c0_16], %18 {strides = array<i32>} : memref<8x128xf32, #tpu.memory_space<vmem>>, vector<8x128xf32>,
    return
  }
  func.func @transform_0(%arg0: i32) -> (i32, i32) {
    %c0_i32 = arith.constant 0 : i32
    %c0_i32_0 = arith.constant 0 : i32
    return %arg0, %c0_i32 : i32, i32
  }
  func.func @transform_1(%arg0: i32) -> (i32, i32) {
    %c0_i32 = arith.constant 0 : i32
    %c0_i32_0 = arith.constant 0 : i32
    return %arg0, %c0_i32 : i32, i32
  }
  func.func @transform_2(%arg0: i32) -> (i32, i32) {
    %c0_i32 = arith.constant 0 : i32
    %c0_i32_0 = arith.constant 0 : i32
    %c0_i32_1 = arith.constant 0 : i32
    return %c0_i32, %c0_i32_0 : i32, i32
  }
  func.func @transform_3(%arg0: i32) -> (i32, i32) {
    %c0_i32 = arith.constant 0 : i32
    %c0_i32_0 = arith.constant 0 : i32
    %c0_i32_1 = arith.constant 0 : i32
    return %c0_i32, %c0_i32_0 : i32, i32
  }
  func.func @transform_4(%arg0: i32) -> (i32, i32) {
    %c0_i32 = arith.constant 0 : i32
    %c0_i32_0 = arith.constant 0 : i32
    %c0_i32_1 = arith.constant 0 : i32
    return %c0_i32, %c0_i32_0 : i32, i32
  }
  func.func @transform_5(%arg0: i32) -> (i32, i32) {
    %c0_i32 = arith.constant 0 : i32
    %c0_i32_0 = arith.constant 0 : i32
    %c0_i32_1 = arith.constant 0 : i32
    return %c0_i32, %c0_i32_0 : i32, i32
  }
  func.func @transform_6(%arg0: i32) -> (i32, i32) {
    %c0_i32 = arith.constant 0 : i32
    %c0_i32_0 = arith.constant 0 : i32
    return %arg0, %c0_i32 : i32, i32
  }
}

</mosaic_0001>

<bundles_post_ra>
// kernel: tpu_custom_call.1
= control target key start
LH: loop header
LB: loop body
LE: loop exit
PB: predicated region body
PF: predicated region fallthrough
CT: control target
= control target key end

     0   :  { %11 = vsyncpa [#allocation3], 0  ;;  %s719_s0 = inlined_call_operand.hbm [shape: f32[8,32], index: 0, kind: input, shape index: {}]   ;;  %s720_s1 = inlined_call_operand.hbm [shape: f32[8,48], index: 1, kind: input, shape index: {}]   ;;  %s721_s2 = inlined_call_operand.hbm [shape: bf16[32,128], index: 2, kind: input, shape index: {}]   ;;  %s722_s3 = inlined_call_operand.hbm [shape: bf16[48,128], index: 3, kind: input, shape index: {}]   ;;  %s723_s4 = inlined_call_operand.hbm [shape: bf16[128,128], index: 4, kind: input, shape index: {}]   ;;  %s724_s5 = inlined_call_operand.vmem [shape: f32[1,128], index: 5, kind: input, shape index: {}]   ;;  %s725_s6 = inlined_call_operand.hbm [shape: f32[8,128], index: 6, kind: output, shape index: {}]  }
   0x1   :  { %12 = vsyncpa [#allocation6], 0 }
   0x2   :  { %13 = vsyncpa [#allocation9], 0 }
   0x3   :  { %14 = vsyncpa [#allocation4], 0  ;;  %s587_s21 = smov [#allocation5]   ;;  %s447_s25 = scalar_lea.hbm %s720_s1, 128 }
   0x4   :  { %s31_s22 = sshll.u32 %s587_s21, 4  ;;  %p448_p0 = scmp.ne.s32.totalorder %s720_s1, %s447_s25  ;;  %s32_s22 = int_to_ptr.vmem [resolvable:$true] %s31_s22 }
   0x5   :  { %p451_p1 = scmp.lt.u32.totalorder %s447_s25, %s720_s1 }
   0x7   :  { %p453_p2 = pnand %p451_p1, %p448_p0 }
   0x9   :  { %456 = shalt.err (!%p453_p2)
}
   0xa   :  { %s457_s30 = scalar_lea.vmem %s32_s22, 128  ;;  %p462_p4 = scmp.lt.s32.totalorder %s32_s22, %s32_s22 }
   0xb   :  { %p458_p3 = scmp.ne.s32.totalorder %s32_s22, %s457_s30  ;;  %p463_p5 = scmp.lt.s32.totalorder %s457_s30, %s457_s30 }
   0xd   :  { %p464_p6 = por %p463_p5, %p462_p4 }
   0xf   :  { %p465_p7 = pnand %p464_p6, %p458_p3 }
  0x11   :  { %468 = shalt.err (!%p465_p7)
}
  0x12   :  { %34 = dma.hbm_to_vmem [thread:$0]  %s720_s1, 128, %s32_s22, [#allocation6]  }
  0x13   :  { %s588_s9 = smov [#allocation8]   ;;  %s589_s11 = smov [#allocation2]  }
  0x14   :  { %s52_s10 = sshll.u32 %s588_s9, 4  ;;  %s21_s12 = sshll.u32 %s589_s11, 4  ;;  %s53_s10 = int_to_ptr.vmem [resolvable:$true] %s52_s10  ;;  %s22_s12 = int_to_ptr.vmem [resolvable:$true] %s21_s12 }
  0x15   :  { %s469_s15 = scalar_lea.hbm %s722_s3, 384 }
  0x16   :  { %p470_p8 = scmp.ne.s32.totalorder %s722_s3, %s469_s15  ;;  %p473_p9 = scmp.lt.u32.totalorder %s469_s15, %s722_s3 }
  0x18   :  { %p475_p10 = pnand %p473_p9, %p470_p8 }
  0x1a   :  { %478 = shalt.err (!%p475_p10)
}
  0x1b   :  { %s479_s1 = scalar_lea.vmem %s53_s10, 384  ;;  %p484_p12 = scmp.lt.s32.totalorder %s53_s10, %s53_s10 }
  0x1c   :  { %p480_p11 = scmp.ne.s32.totalorder %s53_s10, %s479_s1  ;;  %p485_p13 = scmp.lt.s32.totalorder %s479_s1, %s479_s1 }
  0x1e   :  { %p486_p0 = por %p485_p13, %p484_p12 }
  0x20   :  { %p487_p1 = pnand %p486_p0, %p480_p11 }
  0x22   :  { %490 = shalt.err (!%p487_p1)
}
  0x23   :  { %s590_s20 = smov 64   ;;  %s591_s21 = smov 4  }
  0x24   :  { %58 = dma.hbm_to_vmem [thread:$0]  %s722_s3, 384, %s53_s10, [#allocation9], %s590_s20, %s590_s20, %s591_s21  }
  0x25   :  { %s491_s26 = scalar_lea.hbm %s719_s0, 128 }
  0x26   :  { %p492_p2 = scmp.ne.s32.totalorder %s719_s0, %s491_s26  ;;  %p495_p3 = scmp.lt.u32.totalorder %s491_s26, %s719_s0 }
  0x28   :  { %p497_p4 = pnand %p495_p3, %p492_p2 }
  0x2a   :  { %500 = shalt.err (!%p497_p4)
}
  0x2b   :  { %s501_s7 = scalar_lea.vmem %s22_s12, 128  ;;  %p506_p6 = scmp.lt.s32.totalorder %s22_s12, %s22_s12 }
  0x2c   :  { %p502_p5 = scmp.ne.s32.totalorder %s22_s12, %s501_s7  ;;  %p507_p7 = scmp.lt.s32.totalorder %s501_s7, %s501_s7 }
  0x2e   :  { %p508_p8 = por %p507_p7, %p506_p6 }
  0x30   :  { %p509_p9 = pnand %p508_p8, %p502_p5 }
  0x32   :  { %512 = shalt.err (!%p509_p9)
}
  0x33   :  { %24 = dma.hbm_to_vmem [thread:$0]  %s719_s0, 128, %s22_s12, [#allocation3]  }
  0x34   :  { %s592_s9 = smov [#allocation7]   ;;  %s593_s11 = smov [#allocation10]  }
  0x35   :  { %s40_s10 = sshll.u32 %s592_s9, 4  ;;  %s64_s13 = sshll.u32 %s593_s11, 4  ;;  %s41_s10 = int_to_ptr.vmem [resolvable:$true] %s40_s10  ;;  %s65_s13 = int_to_ptr.vmem [resolvable:$true] %s64_s13 }
  0x36   :  { %s513_s16 = scalar_lea.hbm %s721_s2, 256 }
  0x37   :  { %p514_p10 = scmp.ne.s32.totalorder %s721_s2, %s513_s16  ;;  %p517_p11 = scmp.lt.u32.totalorder %s513_s16, %s721_s2 }
  0x39   :  { %p519_p12 = pnand %p517_p11, %p514_p10 }
  0x3b   :  { %522 = shalt.err (!%p519_p12)
}
  0x3c   :  { %s523_s0 = scalar_lea.vmem %s41_s10, 256  ;;  %p528_p0 = scmp.lt.s32.totalorder %s41_s10, %s41_s10 }
  0x3d   :  { %p524_p13 = scmp.ne.s32.totalorder %s41_s10, %s523_s0  ;;  %p529_p1 = scmp.lt.s32.totalorder %s523_s0, %s523_s0 }
  0x3f   :  { %p530_p2 = por %p529_p1, %p528_p0 }
  0x41   :  { %p531_p3 = pnand %p530_p2, %p524_p13 }
  0x43   :  { %534 = shalt.err (!%p531_p3)
}
  0x44   :  { %46 = dma.hbm_to_vmem [thread:$0]  %s721_s2, 256, %s41_s10, [#allocation6], %s590_s20, %s590_s20, %s591_s21  }
  0x45   :  { %s535_s25 = scalar_lea.hbm %s723_s4, 1024 }
  0x46   :  { %p536_p4 = scmp.ne.s32.totalorder %s723_s4, %s535_s25  ;;  %p539_p5 = scmp.lt.u32.totalorder %s535_s25, %s723_s4 }
  0x48   :  { %p541_p6 = pnand %p539_p5, %p536_p4 }
  0x4a   :  { %544 = shalt.err (!%p541_p6)
}
  0x4b   :  { %s545_s30 = scalar_lea.vmem %s65_s13, 1024  ;;  %p550_p8 = scmp.lt.s32.totalorder %s65_s13, %s65_s13 }
  0x4c   :  { %p546_p7 = scmp.ne.s32.totalorder %s65_s13, %s545_s30  ;;  %p551_p9 = scmp.lt.s32.totalorder %s545_s30, %s545_s30 }
  0x4e   :  { %p552_p10 = por %p551_p9, %p550_p8 }
  0x50   :  { %p553_p11 = pnand %p552_p10, %p546_p7 }
  0x52   :  { %556 = shalt.err (!%p553_p11)
}
  0x53   :  { %70 = dma.hbm_to_vmem [thread:$0]  %s723_s4, 1024, %s65_s13, [#allocation9], %s590_s20, %s590_s20, %s591_s21  }
  0x54   :  { %579 = dma.done.wait [#allocation3], 128  }
  0x55   :  { %580 = vsyncadd [#allocation3], 4294967168 }
  0x56   :  { %581 = dma.done.wait [#allocation6], 384  }
  0x57   :  { %582 = vsyncadd [#allocation6], 4294966912 }
  0x58   :  { %583 = dma.done.wait [#allocation9], 1408  }
  0x59   :  { %584 = vsyncadd [#allocation9], 4294965888  ;;  %v594_v0 = vmov 0.0   ;;  %vm595_vm0 = vmmov 0   ;;  %v434_v1 = vld [vmem:[#allocation7] sm:$0xff]   ;;  %v435_v2 = vld [vmem:[#allocation7 + $0x8] sm:$0xff]  }
  0x5a   :  { %386 = vmatprep.subr.bf16.mxu1 %v594_v0  ;;  %390 = vmatprep.mubr.msk.bf16.mxu1 %vm595_vm0, %v594_v0  ;;  %v89_v3 = vld [vmem:[#allocation2] sm:$0xff]  ;;  %vm107_vm1 = vcmask 261120   ;;  %v439_v6 = vld [vmem:[#allocation10] sm:$0xff]   ;;  %v437_v7 = vld [vmem:[#allocation8 + $0x8] sm:$0xff]   ;;  %vm178_vm2 = vcmask 392192   ;;  %s596_s21 = smov [#allocation11]  }
  0x5b   :  { %404 = vmatprep.subr.bf16.mxu0 %v594_v0  ;;  %420 = vmatprep.mubr.msk.bf16.mxu0 %vm595_vm0, %v594_v0  ;;  %v90_v4 = vpack.c.bf16 %v89_v3, %v89_v3  ;;  %v436_v5 = vld [vmem:[#allocation8] sm:$0xff]   ;;  %v441_v9 = vld [vmem:[#allocation10 + $0x10] sm:$0xff]   ;;  %v438_v10 = vld [vmem:[#allocation8 + $0x10] sm:$0xff]   ;;  %s343_s3 = sshll.u32 %s596_s21, 4  ;;  %s344_s3 = int_to_ptr.vmem [resolvable:$true] %s343_s3 }
  0x5c   :  { %387 = vmatpush3.bf16.msra.mxu1 %v434_v1  ;;  %405 = vmatpush3.bf16.msra.mxu0 %v439_v6  ;;  %v440_v8 = vld [vmem:[#allocation10 + $0x8] sm:$0xff]   ;;  %v152_v11 = vld [vmem:[#allocation5] sm:$0xff]  ;;  %v442_v13 = vld [vmem:[#allocation10 + $0x18] sm:$0xff]   ;;  %s557_s8 = scalar_lea.vmem %s344_s3, 128  ;;  %p562_p13 = scmp.lt.s32.totalorder %s344_s3, %s344_s3 }
  0x5d   :  { %388 = vmatprep.subr.bf16.mxu1 %v594_v0  ;;  %406 = vmatprep.subr.bf16.mxu0 %v594_v0  ;;  %v153_v12 = vpack.c.bf16 %v152_v11, %v152_v11  ;;  %v443_v14 = vld [vmem:[#allocation10 + $0x20] sm:$0xff]   ;;  %v444_v15 = vld [vmem:[#allocation10 + $0x28] sm:$0xff]   ;;  %v445_v16 = vld [vmem:[#allocation10 + $0x30] sm:$0xff]   ;;  %p558_p12 = scmp.ne.s32.totalorder %s344_s3, %s557_s8  ;;  %p563_p0 = scmp.lt.s32.totalorder %s557_s8, %s557_s8 }
  0x5e   :  { %v446_v17 = vld [vmem:[#allocation10 + $0x38] sm:$0xff]   ;;  %v361_v30 = vld [vmem:[%s724_s5] ss:$0 sm:$0xff] }
  0x5f   :  { %p564_p1 = por %p563_p0, %p562_p13 }
  0x60   :  { %389 = vmatpush3.bf16.msra.mxu1 %v435_v2  ;;  %407 = vmatpush3.bf16.msra.mxu0 %v440_v8 }
  0x61   :  { %394 = vmatprep.subr.bf16.mxu1 %v594_v0  ;;  %408 = vmatprep.subr.bf16.mxu0 %v594_v0  ;;  %p565_p2 = pnand %p564_p1, %p558_p12 }
  0x63   :  { %391 = vmatmul.mubr.msk.bf16.vlgmr.msra.gmra.mrb[0].mxu1 %vm107_vm1, %v90_v4 }
  0x64   :  { %395 = vmatpush3.bf16.msra.mxu1 %v436_v5  ;;  %400 = vmatprep.mubr.msk.bf16.mxu1 %vm595_vm0, %v594_v0 }
  0x65   :  { %396 = vmatprep.subr.bf16.mxu1 %v594_v0  ;;  %409 = vmatpush3.bf16.msra.mxu0 %v441_v9 }
  0x66   :  { %410 = vmatprep.subr.bf16.mxu0 %v594_v0 }
  0x68   :  { %397 = vmatpush3.bf16.msra.mxu1 %v437_v7 }
  0x69   :  { %398 = vmatprep.subr.bf16.mxu1 %v594_v0  ;;  %411 = vmatpush3.bf16.msra.mxu0 %v442_v13 }
  0x6a   :  { %412 = vmatprep.subr.bf16.mxu0 %v594_v0 }
  0x6c   :  { %399 = vmatpush3.bf16.msra.mxu1 %v438_v10 }
  0x6d   :  { %413 = vmatpush3.bf16.msra.mxu0 %v443_v14 }
  0x6e   :  { %414 = vmatprep.subr.bf16.mxu0 %v594_v0 }
  0x6f   :  { %401 = vmatmul.mubr.msk.bf16.vlgmr.msra.gmra.mrb[4].mxu1 %vm178_vm2, %v153_v12 }
  0x71   :  { %415 = vmatpush3.bf16.msra.mxu0 %v444_v15 }
  0x72   :  { %416 = vmatprep.subr.bf16.mxu0 %v594_v0 }
  0x75   :  { %417 = vmatpush3.bf16.msra.mxu0 %v445_v16 }
  0x76   :  { %418 = vmatprep.subr.bf16.mxu0 %v594_v0 }
  0x79   :  { %419 = vmatpush3.bf16.msra.mxu0 %v446_v17 }
 0x136   :  { %v145_v18 = vpop.f32.mrb[0].mxu1 }
 0x137   :  { %v392_v19 = vpop.f32.mrb[1].mxu1  ;;  %v151_v23 = vmax.f32 %v145_v18, 0.0 }
 0x138   :  { %v148_v20 = vpop.f32.mrb[2].mxu1 }
 0x139   :  { %v393_v21 = vpop.f32.mrb[3].mxu1 }
 0x142   :  { %v216_v22 = vpop.f32.mrb[4].mxu1 }
 0x143   :  { %v222_v24 = vmax.f32 %v216_v22, 0.0  ;;  %v402_v25 = vpop.f32.mrb[5].mxu1 }
 0x144   :  { %v219_v26 = vpop.f32.mrb[6].mxu1 }
 0x145   :  { %v223_v27 = vmul.f32 %v222_v24, %v151_v23  ;;  %v403_v28 = vpop.f32.mrb[7].mxu1 }
 0x147   :  { %v224_v29 = vpack.c.bf16 %v223_v27, %v223_v27 }
 0x149   :  { %421 = vmatmul.mubr.bf16.vlgmr.msra.gmra.mrb[0].mxu0 %v224_v29 }
 0x21c   :  { %v330_v31 = vpop.f32.mrb[0].mxu0 }
 0x21d   :  { %v331_v32 = vadd.f32 %v361_v30, %v330_v31  ;;  %v422_v33 = vpop.f32.mrb[1].mxu0 }
 0x21e   :  { %v333_v34 = vpop.f32.mrb[2].mxu0 }
 0x21f   :  { %336 = vst [vmem:[#allocation11] sm:$0xff] %v331_v32  ;;  %v423_v35 = vpop.f32.mrb[3].mxu0 }
 0x220   :  { %568 = shalt.err (!%p565_p2)
}
 0x221   :  { %s569_s5 = scalar_lea.hbm %s725_s6, 128 }
 0x222   :  { %p570_p3 = scmp.ne.s32.totalorder %s725_s6, %s569_s5  ;;  %p573_p4 = scmp.lt.u32.totalorder %s569_s5, %s725_s6 }
 0x224   :  { %p575_p5 = pnand %p573_p4, %p570_p3 }
 0x226   :  { %578 = shalt.err (!%p575_p5)
}
 0x227   :  { %346 = dma.vmem_to_hbm [thread:$0]  %s344_s3, 128, %s725_s6, [#allocation4]  }
 0x228   :  { %585 = dma.done.wait [#allocation4], 128  }
 0x229   :  { %586 = vsyncadd [#allocation4], 4294967168 }
 0x22a   :  { %350 = vsyncpa [#allocation3], 1 }
 0x22b   :  { %351 = vsyncpa [#allocation6], 1 }
 0x22c   :  { %352 = vsyncpa [#allocation9], 1 }
 0x22d   :  { %353 = vsyncpa [#allocation4], 1 }

</bundles_post_ra>
